<compile_context>
chip_gen: v7x
topology: tpu7x:2x2x1
jax: 0.10.0
libtpu: 0.0.40
codegen_flags: <defaults>
</compile_context>

<pallas_src>
import functools

import jax
import jax.numpy as jnp
from jax import lax
from jax.experimental import pallas as pl
from jax.experimental.pallas import tpu as pltpu

DROPOUT_P = 0.2


def _round_up(x, m):
    return (x + m - 1) // m * m


def _ffn_kernel(seed_ref, x_ref, w1_ref, b1_ref, w2_ref, b2_ref, o_ref,
                *, dropout_p, training):
    # x_ref: (tm, C)  w1_ref: (C, 4C)  b1_ref: (1, 4C)  w2_ref: (4C, C)  b2_ref: (1, C)
    # Matmuls run in the input dtype (bf16 by default) with f32 accumulation.
    h = jnp.dot(x_ref[...], w1_ref[...], preferred_element_type=jnp.float32)
    h = jnp.maximum(h + b1_ref[...], 0.0)                       # bias + ReLU (f32)
    y = jnp.dot(h.astype(w2_ref.dtype), w2_ref[...],
                preferred_element_type=jnp.float32) + b2_ref[...]

    if training and dropout_p > 0.0:
        # Inverted dropout with a counter-based hash PRNG (pure VPU integer ops).
        tm, c = y.shape
        pid = pl.program_id(0).astype(jnp.uint32)
        row = lax.broadcasted_iota(jnp.uint32, y.shape, 0)
        col = lax.broadcasted_iota(jnp.uint32, y.shape, 1)
        # unique element counter across the whole output
        idx = (pid * jnp.uint32(tm) + row) * jnp.uint32(c) + col
        bits = idx ^ (seed_ref[0].astype(jnp.uint32) * jnp.uint32(0x9E3779B9))
        # murmur-style 32-bit finalizer for good bit mixing
        bits = bits ^ (bits >> 16)
        bits = bits * jnp.uint32(0x7FEB352D)
        bits = bits ^ (bits >> 15)
        bits = bits * jnp.uint32(0x846CA68B)
        bits = bits ^ (bits >> 16)
        # keep-test directly on the uint32 bits: P(drop) = dropout_p
        threshold = jnp.uint32(int(round(dropout_p * (2 ** 32))))
        keep = bits >= threshold
        y = jnp.where(keep, y * (1.0 / (1.0 - dropout_p)), 0.0)

    o_ref[...] = y.astype(o_ref.dtype)


def feedforward(x, params, *, seed=0, training=False, dropout_p=DROPOUT_P,
                tm=256, matmul_dtype=jnp.bfloat16):
    """x: (B, T, C). params = (w1, b1, w2, b2). Fused Linear-ReLU-Linear-Dropout."""
    w1, b1, w2, b2 = params
    B, T, C = x.shape
    H = w1.shape[1]                       # 4 * n_embd

    x2 = x.reshape(B * T, C)
    N = x2.shape[0]

    # Tile the token axis; pad (instead of asserting divisibility) and cap the
    # tile for tiny problems.  tm stays a multiple of 8 (sublane granularity).
    tm_eff = min(tm, _round_up(N, 8))
    n_pad = _round_up(N, tm_eff)
    if n_pad != N:
        x2 = jnp.pad(x2, ((0, n_pad - N), (0, 0)))

    # bf16 matmul inputs (f32 accumulate inside the kernel); biases stay f32.
    x2m = x2.astype(matmul_dtype)
    w1m = w1.astype(matmul_dtype)
    w2m = w2.astype(matmul_dtype)
    b1f = b1.reshape(1, H).astype(jnp.float32)
    b2f = b2.reshape(1, C).astype(jnp.float32)

    kern = functools.partial(_ffn_kernel,
                             dropout_p=float(dropout_p),
                             training=bool(training))

    out = pl.pallas_call(
        kern,
        out_shape=jax.ShapeDtypeStruct((n_pad, C), x.dtype),
        grid_spec=pltpu.PrefetchScalarGridSpec(
            num_scalar_prefetch=1,                         # dropout seed in SMEM
            grid=(n_pad // tm_eff,),
            in_specs=[
                pl.BlockSpec((tm_eff, C), lambda i, seed: (i, 0)),   # x rows
                pl.BlockSpec((C, H), lambda i, seed: (0, 0)),        # w1 (resident)
                pl.BlockSpec((1, H), lambda i, seed: (0, 0)),        # b1
                pl.BlockSpec((H, C), lambda i, seed: (0, 0)),        # w2 (resident)
                pl.BlockSpec((1, C), lambda i, seed: (0, 0)),        # b2
            ],
            out_specs=pl.BlockSpec((tm_eff, C), lambda i, seed: (i, 0)),
        ),
        compiler_params=pltpu.CompilerParams(
            dimension_semantics=("parallel",),
            vmem_limit_bytes=64 * 1024 * 1024),
    )(jnp.array([seed], dtype=jnp.int32), x2m, w1m, b1f, w2m, b2f)

    return out[:N].reshape(B, T, C)


def init_params(key, n_embd, dtype=jnp.float32):
    """Deterministic init, mirroring nn.Linear's U(-1/sqrt(fan_in), 1/sqrt(fan_in))."""
    hidden = 4 * n_embd
    k1, k2, k3, k4 = jax.random.split(key, 4)
    lim1 = 1.0 / jnp.sqrt(n_embd)
    lim2 = 1.0 / jnp.sqrt(hidden)
    w1 = jax.random.uniform(k1, (n_embd, hidden), dtype, -lim1, lim1)
    b1 = jax.random.uniform(k2, (hidden,), dtype, -lim1, lim1)
    w2 = jax.random.uniform(k3, (hidden, n_embd), dtype, -lim2, lim2)
    b2 = jax.random.uniform(k4, (n_embd,), dtype, -lim2, lim2)
    return w1, b1, w2, b2


def feedforward_ref(x, params):
    """Pure-JAX reference (eval mode: dropout is identity)."""
    w1, b1, w2, b2 = params
    h = jnp.maximum(x @ w1 + b1, 0.0)
    return h @ w2 + b2


if __name__ == "__main__":
    n_embd = 32          # hidden = 4 * n_embd = 128
    B, T = 2, 8

    key = jax.random.PRNGKey(0)
    kx, kp = jax.random.split(key)
    x = jax.random.normal(kx, (B, T, n_embd), dtype=jnp.float32)
    params = init_params(kp, n_embd)

    y_ref = feedforward_ref(x, params)

    # Eval mode, f32 matmul path: tight check against the pure-JAX reference.
    y_f32 = jax.block_until_ready(
        feedforward(x, params, training=False, matmul_dtype=jnp.float32))
    assert jnp.allclose(y_f32, y_ref, atol=1e-5, rtol=1e-5), "f32 eval mismatch"

    # Eval mode, default bf16 matmul path (f32 accumulate): loose tolerance.
    y_bf16 = jax.block_until_ready(feedforward(x, params, training=False))
    assert jnp.allclose(y_bf16, y_ref, atol=5e-2, rtol=5e-2), "bf16 eval mismatch"

    # Train mode: exercises in-kernel dropout (different RNG stream than torch).
    y_train = jax.block_until_ready(feedforward(x, params, training=True, seed=123))
    assert y_train.shape == x.shape
    dropped_frac = float(jnp.mean(y_train == 0.0))
    assert 0.02 < dropped_frac < 0.5, f"unexpected dropout fraction {dropped_frac}"

    print("KERNEL_OK")
</pallas_src>

<mosaic_0001>
module attributes {stable_mosaic.version = 11 : i64} {
  func.func @_ffn_kernel(%arg0: i32, %arg1: memref<1xi32, #tpu.memory_space<smem>>, %arg2: memref<16x32xf32, #tpu.memory_space<vmem>>, %arg3: memref<32x128xf32, #tpu.memory_space<vmem>>, %arg4: memref<1x128xf32, #tpu.memory_space<vmem>>, %arg5: memref<128x32xf32, #tpu.memory_space<vmem>>, %arg6: memref<1x32xf32, #tpu.memory_space<vmem>>, %arg7: memref<16x32xf32, #tpu.memory_space<vmem>>) attributes {dimension_semantics = [#tpu.dimension_semantics<parallel>], iteration_bounds = array<i64: 1>, scalar_prefetch = 1 : i64, scratch_operands = 0 : i64, tpu.core_type = #tpu.core_type<tc>, window_params = [{transform_indices = @transform_0, window_bounds = array<i64: 16, 32>}, {pipeline_mode = #tpu.pipeline_mode<synchronous>, transform_indices = @transform_1, window_bounds = array<i64: 32, 128>}, {pipeline_mode = #tpu.pipeline_mode<synchronous>, transform_indices = @transform_2, window_bounds = array<i64: 1, 128>}, {pipeline_mode = #tpu.pipeline_mode<synchronous>, transform_indices = @transform_3, window_bounds = array<i64: 128, 32>}, {pipeline_mode = #tpu.pipeline_mode<synchronous>, transform_indices = @transform_4, window_bounds = array<i64: 1, 32>}, {transform_indices = @transform_5, window_bounds = array<i64: 16, 32>}]} {
    %c0 = arith.constant 0 : index
    %c0_0 = arith.constant 0 : index
    %0 = vector.load %arg2[%c0, %c0_0] : memref<16x32xf32, #tpu.memory_space<vmem>>, vector<16x32xf32>
    %c0_1 = arith.constant 0 : index
    %c0_2 = arith.constant 0 : index
    %1 = vector.load %arg3[%c0_1, %c0_2] : memref<32x128xf32, #tpu.memory_space<vmem>>, vector<32x128xf32>
    %cst = arith.constant dense<0.000000e+00> : vector<16x128xf32>
    %2 = tpu.matmul %0, %1, %cst {dimension_numbers = #tpu.dot_dimension_numbers<[1], [0], [0], [1], [0, 0, 1, 1], [], []>} : vector<16x32xf32>, vector<32x128xf32>, vector<16x128xf32> -> vector<16x128xf32>
    %c0_3 = arith.constant 0 : index
    %c0_4 = arith.constant 0 : index
    %3 = vector.load %arg4[%c0_3, %c0_4] : memref<1x128xf32, #tpu.memory_space<vmem>>, vector<1x128xf32>
    %4 = vector.broadcast %3 : vector<1x128xf32> to vector<16x128xf32>
    %5 = arith.addf %2, %4 : vector<16x128xf32>
    %cst_5 = arith.constant 0.000000e+00 : f32
    %6 = vector.broadcast %cst_5 : f32 to vector<16x128xf32>
    %7 = arith.maximumf %5, %6 : vector<16x128xf32>
    %c0_6 = arith.constant 0 : index
    %c0_7 = arith.constant 0 : index
    %8 = vector.load %arg5[%c0_6, %c0_7] : memref<128x32xf32, #tpu.memory_space<vmem>>, vector<128x32xf32>
    %cst_8 = arith.constant dense<0.000000e+00> : vector<16x32xf32>
    %9 = tpu.matmul %7, %8, %cst_8 {dimension_numbers = #tpu.dot_dimension_numbers<[1], [0], [0], [1], [0, 0, 1, 1], [], []>} : vector<16x128xf32>, vector<128x32xf32>, vector<16x32xf32> -> vector<16x32xf32>
    %c0_9 = arith.constant 0 : index
    %c0_10 = arith.constant 0 : index
    %10 = vector.load %arg6[%c0_9, %c0_10] : memref<1x32xf32, #tpu.memory_space<vmem>>, vector<1x32xf32>
    %11 = vector.broadcast %10 : vector<1x32xf32> to vector<16x32xf32>
    %12 = arith.addf %9, %11 : vector<16x32xf32>
    %c0_11 = arith.constant 0 : index
    %c0_12 = arith.constant 0 : index
    %13 = vector.load %arg7[%c0_11, %c0_12] : memref<16x32xf32, #tpu.memory_space<vmem>>, vector<16x32xf32>
    tpu.vector_store %arg7[%c0_11, %c0_12], %12 {strides = array<i32>} : memref<16x32xf32, #tpu.memory_space<vmem>>, vector<16x32xf32>,
    return
  }
  func.func @transform_0(%arg0: i32, %arg1: memref<1xi32, #tpu.memory_space<smem>>) -> (i32, i32) {
    %c0_i32 = arith.constant 0 : i32
    %c0_i32_0 = arith.constant 0 : i32
    return %arg0, %c0_i32 : i32, i32
  }
  func.func @transform_1(%arg0: i32, %arg1: memref<1xi32, #tpu.memory_space<smem>>) -> (i32, i32) {
    %c0_i32 = arith.constant 0 : i32
    %c0_i32_0 = arith.constant 0 : i32
    %c0_i32_1 = arith.constant 0 : i32
    return %c0_i32, %c0_i32_0 : i32, i32
  }
  func.func @transform_2(%arg0: i32, %arg1: memref<1xi32, #tpu.memory_space<smem>>) -> (i32, i32) {
    %c0_i32 = arith.constant 0 : i32
    %c0_i32_0 = arith.constant 0 : i32
    %c0_i32_1 = arith.constant 0 : i32
    return %c0_i32, %c0_i32_0 : i32, i32
  }
  func.func @transform_3(%arg0: i32, %arg1: memref<1xi32, #tpu.memory_space<smem>>) -> (i32, i32) {
    %c0_i32 = arith.constant 0 : i32
    %c0_i32_0 = arith.constant 0 : i32
    %c0_i32_1 = arith.constant 0 : i32
    return %c0_i32, %c0_i32_0 : i32, i32
  }
  func.func @transform_4(%arg0: i32, %arg1: memref<1xi32, #tpu.memory_space<smem>>) -> (i32, i32) {
    %c0_i32 = arith.constant 0 : i32
    %c0_i32_0 = arith.constant 0 : i32
    %c0_i32_1 = arith.constant 0 : i32
    return %c0_i32, %c0_i32_0 : i32, i32
  }
  func.func @transform_5(%arg0: i32, %arg1: memref<1xi32, #tpu.memory_space<smem>>) -> (i32, i32) {
    %c0_i32 = arith.constant 0 : i32
    %c0_i32_0 = arith.constant 0 : i32
    return %arg0, %c0_i32 : i32, i32
  }
}

</mosaic_0001>

<bundles_post_ra>
// kernel: tpu_custom_call.1
= control target key start
LH: loop header
LB: loop body
LE: loop exit
PB: predicated region body
PF: predicated region fallthrough
CT: control target
= control target key end

     0   :  { %12 = vsyncpa [#allocation5], 0  ;;  %s703_s0 = inlined_call_operand.<no memory space> [shape: s32[1], index: 0, kind: input, shape index: {}]   ;;  %s704_s1 = inlined_call_operand.hbm [shape: f32[16,32], index: 1, kind: input, shape index: {}]   ;;  %s705_s2 = inlined_call_operand.hbm [shape: f32[32,128], index: 2, kind: input, shape index: {}]   ;;  %s706_s3 = inlined_call_operand.hbm [shape: f32[1,128], index: 3, kind: input, shape index: {}]   ;;  %s707_s4 = inlined_call_operand.hbm [shape: f32[128,32], index: 4, kind: input, shape index: {}]   ;;  %s708_s5 = inlined_call_operand.hbm [shape: f32[1,32], index: 5, kind: input, shape index: {}]   ;;  %s709_s6 = inlined_call_operand.hbm [shape: f32[16,32], index: 6, kind: output, shape index: {}]  }
   0x1   :  { %13 = vsyncpa [#allocation8], 0 }
   0x2   :  { %14 = vsyncpa [#allocation11], 0 }
   0x3   :  { %15 = vsyncpa [#allocation6], 0  ;;  %s565_s0 = smov [#allocation7]   ;;  %s566_s22 = smov [#allocation10]  }
   0x4   :  { %s33_s21 = sshll.u32 %s565_s0, 4  ;;  %s55_s23 = sshll.u32 %s566_s22, 4  ;;  %s34_s21 = int_to_ptr.vmem [resolvable:$true] %s33_s21  ;;  %s608_s23 = int_to_ptr.vmem [resolvable:$true] %s55_s23 }
   0x5   :  { %s425_s26 = scalar_lea.hbm %s705_s2, 512 }
   0x6   :  { %p426_p0 = scmp.ne.s32.totalorder %s705_s2, %s425_s26  ;;  %p429_p1 = scmp.lt.u32.totalorder %s425_s26, %s705_s2 }
   0x8   :  { %p431_p2 = pnand %p429_p1, %p426_p0 }
   0xa   :  { %434 = shalt.err (!%p431_p2)
}
   0xb   :  { %s435_s7 = scalar_lea.vmem %s34_s21, 512  ;;  %p440_p4 = scmp.lt.s32.totalorder %s34_s21, %s34_s21 }
   0xc   :  { %p436_p3 = scmp.ne.s32.totalorder %s34_s21, %s435_s7  ;;  %p441_p5 = scmp.lt.s32.totalorder %s435_s7, %s435_s7 }
   0xe   :  { %p442_p6 = por %p441_p5, %p440_p4 }
  0x10   :  { %p443_p7 = pnand %p442_p6, %p436_p3 }
  0x12   :  { %446 = shalt.err (!%p443_p7)
}
  0x13   :  { %s567_s8 = smov 128   ;;  %s568_s9 = smov 8  }
  0x14   :  { %39 = dma.hbm_to_vmem [thread:$0]  %s705_s2, 512, %s34_s21, [#allocation8], %s567_s8, %s567_s8, %s568_s9  }
  0x15   :  { %s447_s14 = scalar_lea.hbm %s707_s4, 2048 }
  0x16   :  { %p448_p8 = scmp.ne.s32.totalorder %s707_s4, %s447_s14  ;;  %p451_p9 = scmp.lt.u32.totalorder %s447_s14, %s707_s4 }
  0x18   :  { %p453_p10 = pnand %p451_p9, %p448_p8 }
  0x1a   :  { %456 = shalt.err (!%p453_p10)
}
  0x1b   :  { %s457_s19 = scalar_lea.vmem %s608_s23, 2048  ;;  %p462_p12 = scmp.lt.s32.totalorder %s608_s23, %s608_s23 }
  0x1c   :  { %p458_p11 = scmp.ne.s32.totalorder %s608_s23, %s457_s19  ;;  %p463_p13 = scmp.lt.s32.totalorder %s457_s19, %s457_s19 }
  0x1e   :  { %p464_p0 = por %p463_p13, %p462_p12 }
  0x20   :  { %p465_p1 = pnand %p464_p0, %p458_p11 }
  0x22   :  { %468 = shalt.err (!%p465_p1)
}
  0x23   :  { %61 = dma.hbm_to_vmem [thread:$0]  %s707_s4, 2048, %s608_s23, [#allocation11], %s567_s8, %s567_s8, %s568_s9  }
  0x24   :  { %s569_s0 = smov [#allocation4]   ;;  %s570_s22 = smov [#allocation9]  }
  0x25   :  { %s21_s21 = sshll.u32 %s569_s0, 4  ;;  %s46_s24 = sshll.u32 %s570_s22, 4  ;;  %s22_s21 = int_to_ptr.vmem [resolvable:$true] %s21_s21  ;;  %s47_s24 = int_to_ptr.vmem [resolvable:$true] %s46_s24 }
  0x26   :  { %s469_s27 = scalar_lea.hbm %s704_s1, 256 }
  0x27   :  { %p470_p2 = scmp.ne.s32.totalorder %s704_s1, %s469_s27  ;;  %p473_p3 = scmp.lt.u32.totalorder %s469_s27, %s704_s1 }
  0x29   :  { %p475_p4 = pnand %p473_p3, %p470_p2 }
  0x2b   :  { %478 = shalt.err (!%p475_p4)
}
  0x2c   :  { %s479_s4 = scalar_lea.vmem %s22_s21, 256  ;;  %p484_p6 = scmp.lt.s32.totalorder %s22_s21, %s22_s21 }
  0x2d   :  { %p480_p5 = scmp.ne.s32.totalorder %s22_s21, %s479_s4  ;;  %p485_p7 = scmp.lt.s32.totalorder %s479_s4, %s479_s4 }
  0x2f   :  { %p486_p8 = por %p485_p7, %p484_p6 }
  0x31   :  { %p487_p9 = pnand %p486_p8, %p480_p5 }
  0x33   :  { %490 = shalt.err (!%p487_p9)
}
  0x34   :  { %27 = dma.hbm_to_vmem [thread:$0]  %s704_s1, 256, %s22_s21, [#allocation5], %s567_s8, %s567_s8, %s568_s9  }
  0x35   :  { %s491_s13 = scalar_lea.hbm %s706_s3, 16 }
  0x36   :  { %p492_p10 = scmp.ne.s32.totalorder %s706_s3, %s491_s13  ;;  %p495_p11 = scmp.lt.u32.totalorder %s491_s13, %s706_s3 }
  0x38   :  { %p497_p12 = pnand %p495_p11, %p492_p10 }
  0x3a   :  { %500 = shalt.err (!%p497_p12)
}
  0x3b   :  { %s501_s18 = scalar_lea.vmem %s47_s24, 16  ;;  %s505_s19 = scalar_lea.vmem %s47_s24, 32 }
  0x3c   :  { %p502_p13 = scmp.ne.s32.totalorder %s47_s24, %s501_s18  ;;  %p506_p0 = scmp.lt.s32.totalorder %s47_s24, %s47_s24 }
  0x3d   :  { %p507_p1 = scmp.lt.s32.totalorder %s505_s19, %s501_s18 }
  0x3f   :  { %p508_p2 = por %p507_p1, %p506_p0 }
  0x41   :  { %p509_p3 = pnand %p508_p2, %p502_p13 }
  0x43   :  { %512 = shalt.err (!%p509_p3)
}
  0x44   :  { %49 = dma.hbm_to_vmem [thread:$0]  %s706_s3, 16, %s47_s24, [#allocation8]  }
  0x45   :  { %s571_s20 = smov [#allocation12]   ;;  %s513_s25 = scalar_lea.hbm %s708_s5, 16 }
  0x46   :  { %s68_s0 = sshll.u32 %s571_s20, 4  ;;  %p514_p4 = scmp.ne.s32.totalorder %s708_s5, %s513_s25  ;;  %s69_s0 = int_to_ptr.vmem [resolvable:$true] %s68_s0 }
  0x47   :  { %p517_p5 = scmp.lt.u32.totalorder %s513_s25, %s708_s5 }
  0x49   :  { %p519_p6 = pnand %p517_p5, %p514_p4 }
  0x4b   :  { %522 = shalt.err (!%p519_p6)
}
  0x4c   :  { %s523_s30 = scalar_lea.vmem %s69_s0, 16  ;;  %s527_s3 = scalar_lea.vmem %s69_s0, 32 }
  0x4d   :  { %p524_p7 = scmp.ne.s32.totalorder %s69_s0, %s523_s30  ;;  %p528_p8 = scmp.lt.s32.totalorder %s69_s0, %s69_s0 }
  0x4e   :  { %p529_p9 = scmp.lt.s32.totalorder %s527_s3, %s523_s30 }
  0x50   :  { %p530_p10 = por %p529_p9, %p528_p8 }
  0x52   :  { %p531_p11 = pnand %p530_p10, %p524_p7 }
  0x54   :  { %534 = shalt.err (!%p531_p11)
}
  0x55   :  { %71 = dma.hbm_to_vmem [thread:$0]  %s708_s5, 16, %s69_s0, [#allocation11]  }
  0x56   :  { %557 = dma.done.wait [#allocation5], 256  }
  0x57   :  { %558 = vsyncadd [#allocation5], 4294967040 }
  0x58   :  { %559 = dma.done.wait [#allocation8], 528  }
  0x59   :  { %560 = vsyncadd [#allocation8], 4294966768 }
  0x5a   :  { %561 = dma.done.wait [#allocation11], 2064  }
  0x5b   :  { %562 = vsyncadd [#allocation11], 4294965232  ;;  %vm100_vm0 = vcmask 261120   ;;  %v89_v0 = vld [vmem:[#allocation7] sm:$0xff]  ;;  %v90_v1 = vld [vmem:[#allocation7 + $0x8] sm:$0xff]  ;;  %s572_s5 = smov [#allocation13]  }
  0x5c   :  { %v91_v2 = vld [vmem:[#allocation7 + $0x10] sm:$0xff]  ;;  %v377_v3 = vpack.c.bf16 %v90_v1, %v89_v0  ;;  %v92_v4 = vld [vmem:[#allocation7 + $0x18] sm:$0xff]  ;;  %v184_v7 = vld [vmem:[#allocation10] sm:$0xff]  ;;  %s289_s4 = sshll.u32 %s572_s5, 4  ;;  %s290_s4 = int_to_ptr.vmem [resolvable:$true] %s289_s4 }
  0x5d   :  { %v87_v5 = vld [vmem:[#allocation4] sm:$0xff]  ;;  %v381_v6 = vpack.c.bf16 %v92_v4, %v91_v2  ;;  %v187_v11 = vld [vmem:[#allocation10 + $0x18] sm:$0xff]  ;;  %v188_v13 = vld [vmem:[#allocation10 + $0x20] sm:$0xff]  ;;  %s535_s23 = scalar_lea.vmem %s290_s4, 256  ;;  %p540_p13 = scmp.lt.s32.totalorder %s290_s4, %s290_s4 }
  0x5e   :  { %339 = vmatprep.mubr.msk.f32.mxu0 %vm100_vm0, %v87_v5  ;;  %v185_v8 = vld [vmem:[#allocation10 + $0x8] sm:$0xff]  ;;  %v186_v9 = vld [vmem:[#allocation10 + $0x10] sm:$0xff]  ;;  %378 = vmatprep.subr.bf16.mxu0 %v377_v3  ;;  %v191_v18 = vld [vmem:[#allocation10 + $0x38] sm:$0xff]  ;;  %p536_p12 = scmp.ne.s32.totalorder %s290_s4, %s535_s23  ;;  %p541_p0 = scmp.lt.s32.totalorder %s535_s23, %s535_s23 }
  0x5f   :  { %v385_v10 = vpack.c.bf16 %v185_v8, %v184_v7  ;;  %380 = vmatpush3.bf16.msra.mxu0 %v377_v3  ;;  %v389_v12 = vpack.c.bf16 %v187_v11, %v186_v9  ;;  %v189_v14 = vld [vmem:[#allocation10 + $0x28] sm:$0xff]  ;;  %v88_v16 = vld [vmem:[#allocation4 + $0x8] sm:$0xff]  ;;  %v192_v20 = vld [vmem:[#allocation10 + $0x40] sm:$0xff] }
  0x60   :  { %382 = vmatprep.subr.bf16.mxu0 %v381_v6  ;;  %v393_v15 = vpack.c.bf16 %v189_v14, %v188_v13  ;;  %v190_v17 = vld [vmem:[#allocation10 + $0x30] sm:$0xff]  ;;  %v193_v21 = vld [vmem:[#allocation10 + $0x48] sm:$0xff]  ;;  %v195_v24 = vld [vmem:[#allocation10 + $0x58] sm:$0xff]  ;;  %p542_p1 = por %p541_p0, %p540_p13 }
  0x61   :  { %386 = vmatprep.subr.bf16.mxu1 %v385_v10  ;;  %v397_v19 = vpack.c.bf16 %v191_v18, %v190_v17  ;;  %v401_v22 = vpack.c.bf16 %v193_v21, %v192_v20  ;;  %v194_v23 = vld [vmem:[#allocation10 + $0x50] sm:$0xff]  ;;  %v196_v26 = vld [vmem:[#allocation10 + $0x60] sm:$0xff]  ;;  %v197_v27 = vld [vmem:[#allocation10 + $0x68] sm:$0xff] }
  0x62   :  { %388 = vmatpush3.bf16.msra.mxu1 %v385_v10  ;;  %v405_v25 = vpack.c.bf16 %v195_v24, %v194_v23  ;;  %v409_v28 = vpack.c.bf16 %v197_v27, %v196_v26  ;;  %v198_v29 = vld [vmem:[#allocation10 + $0x70] sm:$0xff]  ;;  %v199_v30 = vld [vmem:[#allocation10 + $0x78] sm:$0xff]  ;;  %v306_v39 = vld [vmem:[#allocation12] ss:$0 sm:$0xff]  ;;  %p543_p2 = pnand %p542_p1, %p536_p12 }
  0x63   :  { %390 = vmatprep.subr.bf16.mxu1 %v389_v12  ;;  %384 = vmatpush3.bf16.msra.mxu0 %v381_v6  ;;  %v413_v31 = vpack.c.bf16 %v199_v30, %v198_v29  ;;  %v303_v32 = vld [vmem:[#allocation9] ss:$0 sm:$0xff] }
  0x66   :  { %392 = vmatpush3.bf16.msra.mxu1 %v389_v12  ;;  %340 = vmatmul.mubr.msk.f32.vlgmr.msra.gmra.mrb[0].mxu0 %vm100_vm0, %v88_v16 }
  0x67   :  { %394 = vmatprep.subr.bf16.mxu1 %v393_v15 }
  0x6a   :  { %396 = vmatpush3.bf16.msra.mxu1 %v393_v15 }
  0x6b   :  { %398 = vmatprep.subr.bf16.mxu1 %v397_v19 }
  0x6e   :  { %400 = vmatpush3.bf16.msra.mxu1 %v397_v19 }
  0x6f   :  { %402 = vmatprep.subr.bf16.mxu1 %v401_v22 }
  0x72   :  { %404 = vmatpush3.bf16.msra.mxu1 %v401_v22 }
  0x73   :  { %406 = vmatprep.subr.bf16.mxu1 %v405_v25 }
  0x76   :  { %408 = vmatpush3.bf16.msra.mxu1 %v405_v25 }
  0x77   :  { %410 = vmatprep.subr.bf16.mxu1 %v409_v28 }
  0x7a   :  { %412 = vmatpush3.bf16.msra.mxu1 %v409_v28 }
  0x7b   :  { %414 = vmatprep.subr.bf16.mxu1 %v413_v31 }
  0x7e   :  { %416 = vmatpush3.bf16.msra.mxu1 %v413_v31 }
 0x139   :  { %v341_v33 = vpop.f32.mrb[0].mxu0 }
 0x13a   :  { %v179_v34 = vadd.f32 %v341_v33, %v303_v32  ;;  %v173_v35 = vpop.f32.mrb[1].mxu0 }
 0x13b   :  { %v174_v36 = vadd.f32 %v303_v32, %v173_v35 }
 0x13c   :  { %v183_v38 = vmax.f32 %v179_v34, 0.0 }
 0x13d   :  { %v182_v37 = vmax.f32 %v174_v36, 0.0 }
 0x13f   :  { %374 = vmatprep.mubr.f32.mxu1 %v182_v37 }
 0x140   :  { %375 = vmatmul.mubr.f32.vlgmr.msra.gmra.mrb[0].mxu1 %v183_v38 }
 0x213   :  { %v376_v40 = vpop.f32.mrb[0].mxu1 }
 0x214   :  { %v279_v41 = vadd.f32 %v376_v40, %v306_v39  ;;  %v273_v42 = vpop.f32.mrb[1].mxu1 }
 0x215   :  { %v274_v43 = vadd.f32 %v306_v39, %v273_v42 }
 0x216   :  { %283 = vst.msk [vmem:[#allocation13 + $0x8] sm:$0xff] %vm100_vm0, %v279_v41 }
 0x217   :  { %282 = vst.msk [vmem:[#allocation13] sm:$0xff] %vm100_vm0, %v274_v43 }
 0x218   :  { %546 = shalt.err (!%p543_p2)
}
 0x219   :  { %s547_s12 = scalar_lea.hbm %s709_s6, 256 }
 0x21a   :  { %p548_p3 = scmp.ne.s32.totalorder %s709_s6, %s547_s12  ;;  %p551_p4 = scmp.lt.u32.totalorder %s547_s12, %s709_s6 }
 0x21c   :  { %p553_p5 = pnand %p551_p4, %p548_p3 }
 0x21e   :  { %556 = shalt.err (!%p553_p5)
}
 0x21f   :  { %295 = dma.vmem_to_hbm [thread:$0]  %s290_s4, 256, %s709_s6, [#allocation6], %s567_s8, %s567_s8, %s568_s9  }
 0x220   :  { %563 = dma.done.wait [#allocation6], 256  }
 0x221   :  { %564 = vsyncadd [#allocation6], 4294967040 }
 0x222   :  { %299 = vsyncpa [#allocation5], 1 }
 0x223   :  { %300 = vsyncpa [#allocation8], 1 }
 0x224   :  { %301 = vsyncpa [#allocation11], 1 }
 0x225   :  { %302 = vsyncpa [#allocation6], 1 }

</bundles_post_ra>
